<compile_context>
chip_gen: v7x
topology: tpu7x:2x2x1
jax: 0.10.0
libtpu: 0.0.40
codegen_flags: <defaults>
</compile_context>

<pallas_src>
import functools

import jax
import jax.numpy as jnp
from jax.experimental import pallas as pl
from jax.experimental.pallas import tpu as pltpu


def _classifier_kernel(a_cat_ref, w1_ref, w2_ref, w3_ref, o_ref,
                       xw2_ref, xw3_ref, *, num_rels, n_nodes):
    """Fused 3-layer RGCN forward; all operands / intermediates VMEM resident.

    a_cat_ref : (N, R*N)      concatenated adjacency, A_cat[n, r*N+m] = A[r, n, m]
    w1_ref    : (R*N, H1)     pre-stacked input-layer weights (X0 == I)
    w2_ref    : (R, H1, H2)
    w3_ref    : (R, H2, C)
    o_ref     : (N, C)        float32 output
    xw2_ref   : (R*N, H2)     scratch: stacked per-relation projections, layer 2
    xw3_ref   : (R*N, C)      scratch: stacked per-relation projections, layer 3
    """
    cdtype = a_cat_ref.dtype
    a_cat = a_cat_ref[...]                                        # (N, R*N)

    # ---- layer 1: X0 = I  =>  h1 = relu(A_cat @ W1_stack).  One MXU push; the
    #      relation sum happens inside the MXU f32 accumulator (K = R*N).
    h1 = jnp.maximum(
        jnp.dot(a_cat, w1_ref[...], preferred_element_type=jnp.float32), 0.0
    ).astype(cdtype)                                              # (N, H1)

    # ---- layer 2: stack per-relation projections h1 @ W2[r] along K into VMEM
    #      scratch (row offset r*N is sublane-aligned), then ONE wide-K aggregation dot.
    for r in range(num_rels):                                     # static unroll, R tiny
        xw = jnp.dot(h1, w2_ref[r], preferred_element_type=jnp.float32)
        xw2_ref[pl.ds(r * n_nodes, n_nodes), :] = xw.astype(xw2_ref.dtype)
    h2 = jnp.maximum(
        jnp.dot(a_cat, xw2_ref[...], preferred_element_type=jnp.float32), 0.0
    ).astype(cdtype)                                              # (N, H2)

    # ---- layer 3: same pattern, no activation.
    for r in range(num_rels):
        xw = jnp.dot(h2, w3_ref[r], preferred_element_type=jnp.float32)
        xw3_ref[pl.ds(r * n_nodes, n_nodes), :] = xw.astype(xw3_ref.dtype)
    out = jnp.dot(a_cat, xw3_ref[...], preferred_element_type=jnp.float32)
    o_ref[...] = out.astype(o_ref.dtype)                          # single narrow store


def classifier_forward(adj, w1, w2, w3, *, compute_dtype=jnp.float32):
    """Classifier.forward.

    adj: (R, N, N) normalized per-relation adjacency
    w1 : (R, N, H1), w2: (R, H1, H2), w3: (R, H2, C)   ->   (N, C) float32
    """
    R, N, _ = adj.shape
    assert w1.shape[0] == R and w1.shape[1] == N, "input layer expects one-hot node-id features"
    H1, H2, C = w1.shape[2], w2.shape[2], w3.shape[2]

    # Pre-concatenate the relation axis into the contraction (K) axis in the wrapper
    # (layout plumbing, not compute): A_cat[n, r*N + m] = adj[r, n, m].
    a_cat = jnp.transpose(adj, (1, 0, 2)).reshape(N, R * N).astype(compute_dtype)
    w1_stack = w1.reshape(R * N, H1).astype(compute_dtype)        # X0 == I  =>  X0 @ W1[r] = W1[r]
    w2_c = w2.astype(compute_dtype)
    w3_c = w3.astype(compute_dtype)

    itemsize = jnp.dtype(compute_dtype).itemsize
    flops = int(
        2 * N * (R * N) * H1                       # layer-1 aggregation (K = R*N)
        + 2 * R * N * H1 * H2 + 2 * N * (R * N) * H2   # layer-2 projection + aggregation
        + 2 * R * N * H2 * C + 2 * N * (R * N) * C     # layer-3 projection + aggregation
    )
    bytes_accessed = int(
        (N * R * N + R * N * H1 + R * H1 * H2 + R * H2 * C) * itemsize + N * C * 4
    )

    kernel = functools.partial(_classifier_kernel, num_rels=R, n_nodes=N)
    vmem = pl.BlockSpec(memory_space=pltpu.MemorySpace.VMEM)      # whole array, VMEM resident
    return pl.pallas_call(
        kernel,
        out_shape=jax.ShapeDtypeStruct((N, C), jnp.float32),
        in_specs=[vmem, vmem, vmem, vmem],
        out_specs=vmem,
        scratch_shapes=[
            pltpu.VMEM((R * N, H2), compute_dtype),               # stacked XW, layer 2
            pltpu.VMEM((R * N, C), compute_dtype),                # stacked XW, layer 3
        ],
        compiler_params=pltpu.CompilerParams(vmem_limit_bytes=64 * 1024 * 1024),
        cost_estimate=pl.CostEstimate(
            flops=flops, transcendentals=0, bytes_accessed=bytes_accessed
        ),
    )(a_cat, w1_stack, w2_c, w3_c)


def _ref_forward(adj, w1, w2, w3):
    """Pure-JAX f32 reference for the correctness check."""
    N = adj.shape[1]
    x = jnp.eye(N, dtype=jnp.float32)
    for w, act in ((w1, True), (w2, True), (w3, False)):
        xw = jnp.einsum("nm,rmd->rnd", x, w)       # per-relation X @ W[r]
        h = jnp.einsum("rnm,rmd->nd", adj, xw)     # sum_r A[r] @ (X @ W[r])
        x = jnp.maximum(h, 0.0) if act else h
    return x


if __name__ == "__main__":
    # Small shapes consistent with the module:
    #   num_rels R=3, N=16 nodes, in_dim=N=16 (one-hot), hidden_dim=32, h_dim2=16, n_classes=8
    R, N = 3, 16
    in_dim, hidden_dim, h_dim2, n_classes = N, 32, 16, 8

    key = jax.random.PRNGKey(0)
    k_adj, k_w1, k_w2, k_w3 = jax.random.split(key, 4)

    # Random relational graph -> dense per-relation adjacency with 1/in-degree norm.
    edges = (jax.random.uniform(k_adj, (R, N, N)) < 0.3).astype(jnp.float32)
    in_deg = jnp.maximum(edges.sum(axis=2, keepdims=True), 1.0)
    adj = edges / in_deg                                  # (R, N, N)

    def xavier(k, shape):
        fan_in, fan_out = shape[1], shape[2]
        lim = jnp.sqrt(6.0 / (fan_in + fan_out))
        return jax.random.uniform(k, shape, jnp.float32, -lim, lim)

    w1 = xavier(k_w1, (R, in_dim, hidden_dim))
    w2 = xavier(k_w2, (R, hidden_dim, h_dim2))
    w3 = xavier(k_w3, (R, h_dim2, n_classes))

    ref = _ref_forward(adj, w1, w2, w3)

    # f32 path (exact check).
    out = jax.block_until_ready(classifier_forward(adj, w1, w2, w3))
    assert out.shape == (N, n_classes)
    assert jnp.allclose(out, ref, atol=1e-4, rtol=1e-4), "f32 kernel mismatch vs reference"

    # bf16 compute path (halves A's HBM/VMEM bytes, bf16 MXU on v6e/v7x; f32 accumulation).
    out_bf16 = jax.block_until_ready(
        classifier_forward(adj, w1, w2, w3, compute_dtype=jnp.bfloat16)
    )
    assert jnp.allclose(out_bf16, ref, atol=5e-2, rtol=5e-2), "bf16 kernel mismatch vs reference"

    print("KERNEL_OK")
</pallas_src>

<mosaic_0001>
module attributes {stable_mosaic.version = 11 : i64} {
  func.func @_classifier_kernel(%arg0: memref<16x48xf32, #tpu.memory_space<vmem>>, %arg1: memref<48x32xf32, #tpu.memory_space<vmem>>, %arg2: memref<3x32x16xf32, #tpu.memory_space<vmem>>, %arg3: memref<3x16x8xf32, #tpu.memory_space<vmem>>, %arg4: memref<16x8xf32, #tpu.memory_space<vmem>>, %arg5: memref<48x16xf32, #tpu.memory_space<vmem>>, %arg6: memref<48x8xf32, #tpu.memory_space<vmem>>) attributes {dimension_semantics = [], scalar_prefetch = 0 : i64, scratch_operands = 2 : i64, tpu.core_type = #tpu.core_type<tc>} {
    %c0 = arith.constant 0 : index
    %c0_0 = arith.constant 0 : index
    %0 = vector.load %arg0[%c0, %c0_0] : memref<16x48xf32, #tpu.memory_space<vmem>>, vector<16x48xf32>
    %c0_1 = arith.constant 0 : index
    %c0_2 = arith.constant 0 : index
    %1 = vector.load %arg1[%c0_1, %c0_2] : memref<48x32xf32, #tpu.memory_space<vmem>>, vector<48x32xf32>
    %cst = arith.constant dense<0.000000e+00> : vector<16x32xf32>
    %2 = tpu.matmul %0, %1, %cst {dimension_numbers = #tpu.dot_dimension_numbers<[1], [0], [0], [1], [0, 0, 1, 1], [], []>} : vector<16x48xf32>, vector<48x32xf32>, vector<16x32xf32> -> vector<16x32xf32>
    %cst_3 = arith.constant 0.000000e+00 : f32
    %3 = vector.broadcast %cst_3 : f32 to vector<16x32xf32>
    %4 = arith.maximumf %2, %3 : vector<16x32xf32>
    %c0_4 = arith.constant 0 : index
    %c0_5 = arith.constant 0 : index
    %c0_6 = arith.constant 0 : index
    %5 = vector.load %arg2[%c0_4, %c0_5, %c0_6] : memref<3x32x16xf32, #tpu.memory_space<vmem>>, vector<1x32x16xf32>
    %6 = vector.shape_cast %5 : vector<1x32x16xf32> to vector<32x16xf32>
    %cst_7 = arith.constant dense<0.000000e+00> : vector<16x16xf32>
    %7 = tpu.matmul %4, %6, %cst_7 {dimension_numbers = #tpu.dot_dimension_numbers<[1], [0], [0], [1], [0, 0, 1, 1], [], []>} : vector<16x32xf32>, vector<32x16xf32>, vector<16x16xf32> -> vector<16x16xf32>
    %c0_8 = arith.constant 0 : index
    %c0_9 = arith.constant 0 : index
    %8 = vector.load %arg5[%c0_8, %c0_9] : memref<48x16xf32, #tpu.memory_space<vmem>>, vector<16x16xf32>
    tpu.vector_store %arg5[%c0_8, %c0_9], %7 {strides = array<i32>} : memref<48x16xf32, #tpu.memory_space<vmem>>, vector<16x16xf32>,
    %c1 = arith.constant 1 : index
    %c0_10 = arith.constant 0 : index
    %c0_11 = arith.constant 0 : index
    %9 = vector.load %arg2[%c1, %c0_10, %c0_11] : memref<3x32x16xf32, #tpu.memory_space<vmem>>, vector<1x32x16xf32>
    %10 = vector.shape_cast %9 : vector<1x32x16xf32> to vector<32x16xf32>
    %cst_12 = arith.constant dense<0.000000e+00> : vector<16x16xf32>
    %11 = tpu.matmul %4, %10, %cst_12 {dimension_numbers = #tpu.dot_dimension_numbers<[1], [0], [0], [1], [0, 0, 1, 1], [], []>} : vector<16x32xf32>, vector<32x16xf32>, vector<16x16xf32> -> vector<16x16xf32>
    %c16 = arith.constant 16 : index
    %c0_13 = arith.constant 0 : index
    %12 = vector.load %arg5[%c16, %c0_13] : memref<48x16xf32, #tpu.memory_space<vmem>>, vector<16x16xf32>
    tpu.vector_store %arg5[%c16, %c0_13], %11 {strides = array<i32>} : memref<48x16xf32, #tpu.memory_space<vmem>>, vector<16x16xf32>,
    %c2 = arith.constant 2 : index
    %c0_14 = arith.constant 0 : index
    %c0_15 = arith.constant 0 : index
    %13 = vector.load %arg2[%c2, %c0_14, %c0_15] : memref<3x32x16xf32, #tpu.memory_space<vmem>>, vector<1x32x16xf32>
    %14 = vector.shape_cast %13 : vector<1x32x16xf32> to vector<32x16xf32>
    %cst_16 = arith.constant dense<0.000000e+00> : vector<16x16xf32>
    %15 = tpu.matmul %4, %14, %cst_16 {dimension_numbers = #tpu.dot_dimension_numbers<[1], [0], [0], [1], [0, 0, 1, 1], [], []>} : vector<16x32xf32>, vector<32x16xf32>, vector<16x16xf32> -> vector<16x16xf32>
    %c32 = arith.constant 32 : index
    %c0_17 = arith.constant 0 : index
    %16 = vector.load %arg5[%c32, %c0_17] : memref<48x16xf32, #tpu.memory_space<vmem>>, vector<16x16xf32>
    tpu.vector_store %arg5[%c32, %c0_17], %15 {strides = array<i32>} : memref<48x16xf32, #tpu.memory_space<vmem>>, vector<16x16xf32>,
    %c0_18 = arith.constant 0 : index
    %c0_19 = arith.constant 0 : index
    %17 = vector.load %arg5[%c0_18, %c0_19] : memref<48x16xf32, #tpu.memory_space<vmem>>, vector<48x16xf32>
    %cst_20 = arith.constant dense<0.000000e+00> : vector<16x16xf32>
    %18 = tpu.matmul %0, %17, %cst_20 {dimension_numbers = #tpu.dot_dimension_numbers<[1], [0], [0], [1], [0, 0, 1, 1], [], []>} : vector<16x48xf32>, vector<48x16xf32>, vector<16x16xf32> -> vector<16x16xf32>
    %cst_21 = arith.constant 0.000000e+00 : f32
    %19 = vector.broadcast %cst_21 : f32 to vector<16x16xf32>
    %20 = arith.maximumf %18, %19 : vector<16x16xf32>
    %c0_22 = arith.constant 0 : index
    %c0_23 = arith.constant 0 : index
    %c0_24 = arith.constant 0 : index
    %21 = vector.load %arg3[%c0_22, %c0_23, %c0_24] : memref<3x16x8xf32, #tpu.memory_space<vmem>>, vector<1x16x8xf32>
    %22 = vector.shape_cast %21 : vector<1x16x8xf32> to vector<16x8xf32>
    %cst_25 = arith.constant dense<0.000000e+00> : vector<16x8xf32>
    %23 = tpu.matmul %20, %22, %cst_25 {dimension_numbers = #tpu.dot_dimension_numbers<[1], [0], [0], [1], [0, 0, 1, 1], [], []>} : vector<16x16xf32>, vector<16x8xf32>, vector<16x8xf32> -> vector<16x8xf32>
    %c0_26 = arith.constant 0 : index
    %c0_27 = arith.constant 0 : index
    %24 = vector.load %arg6[%c0_26, %c0_27] : memref<48x8xf32, #tpu.memory_space<vmem>>, vector<16x8xf32>
    tpu.vector_store %arg6[%c0_26, %c0_27], %23 {strides = array<i32>} : memref<48x8xf32, #tpu.memory_space<vmem>>, vector<16x8xf32>,
    %c1_28 = arith.constant 1 : index
    %c0_29 = arith.constant 0 : index
    %c0_30 = arith.constant 0 : index
    %25 = vector.load %arg3[%c1_28, %c0_29, %c0_30] : memref<3x16x8xf32, #tpu.memory_space<vmem>>, vector<1x16x8xf32>
    %26 = vector.shape_cast %25 : vector<1x16x8xf32> to vector<16x8xf32>
    %cst_31 = arith.constant dense<0.000000e+00> : vector<16x8xf32>
    %27 = tpu.matmul %20, %26, %cst_31 {dimension_numbers = #tpu.dot_dimension_numbers<[1], [0], [0], [1], [0, 0, 1, 1], [], []>} : vector<16x16xf32>, vector<16x8xf32>, vector<16x8xf32> -> vector<16x8xf32>
    %c16_32 = arith.constant 16 : index
    %c0_33 = arith.constant 0 : index
    %28 = vector.load %arg6[%c16_32, %c0_33] : memref<48x8xf32, #tpu.memory_space<vmem>>, vector<16x8xf32>
    tpu.vector_store %arg6[%c16_32, %c0_33], %27 {strides = array<i32>} : memref<48x8xf32, #tpu.memory_space<vmem>>, vector<16x8xf32>,
    %c2_34 = arith.constant 2 : index
    %c0_35 = arith.constant 0 : index
    %c0_36 = arith.constant 0 : index
    %29 = vector.load %arg3[%c2_34, %c0_35, %c0_36] : memref<3x16x8xf32, #tpu.memory_space<vmem>>, vector<1x16x8xf32>
    %30 = vector.shape_cast %29 : vector<1x16x8xf32> to vector<16x8xf32>
    %cst_37 = arith.constant dense<0.000000e+00> : vector<16x8xf32>
    %31 = tpu.matmul %20, %30, %cst_37 {dimension_numbers = #tpu.dot_dimension_numbers<[1], [0], [0], [1], [0, 0, 1, 1], [], []>} : vector<16x16xf32>, vector<16x8xf32>, vector<16x8xf32> -> vector<16x8xf32>
    %c32_38 = arith.constant 32 : index
    %c0_39 = arith.constant 0 : index
    %32 = vector.load %arg6[%c32_38, %c0_39] : memref<48x8xf32, #tpu.memory_space<vmem>>, vector<16x8xf32>
    tpu.vector_store %arg6[%c32_38, %c0_39], %31 {strides = array<i32>} : memref<48x8xf32, #tpu.memory_space<vmem>>, vector<16x8xf32>,
    %c0_40 = arith.constant 0 : index
    %c0_41 = arith.constant 0 : index
    %33 = vector.load %arg6[%c0_40, %c0_41] : memref<48x8xf32, #tpu.memory_space<vmem>>, vector<48x8xf32>
    %cst_42 = arith.constant dense<0.000000e+00> : vector<16x8xf32>
    %34 = tpu.matmul %0, %33, %cst_42 {dimension_numbers = #tpu.dot_dimension_numbers<[1], [0], [0], [1], [0, 0, 1, 1], [], []>} : vector<16x48xf32>, vector<48x8xf32>, vector<16x8xf32> -> vector<16x8xf32>
    %c0_43 = arith.constant 0 : index
    %c0_44 = arith.constant 0 : index
    %35 = vector.load %arg4[%c0_43, %c0_44] : memref<16x8xf32, #tpu.memory_space<vmem>>, vector<16x8xf32>
    tpu.vector_store %arg4[%c0_43, %c0_44], %34 {strides = array<i32>} : memref<16x8xf32, #tpu.memory_space<vmem>>, vector<16x8xf32>,
    return
  }
}

</mosaic_0001>

<bundles_post_ra>
// kernel: tpu_custom_call.1
= control target key start
LH: loop header
LB: loop body
LE: loop exit
PB: predicated region body
PF: predicated region fallthrough
CT: control target
= control target key end

     0   :  { %9 = vsyncpa [#allocation5], 0  ;;  %s1374_s0 = inlined_call_operand.hbm [shape: f32[16,48], index: 0, kind: input, shape index: {}]   ;;  %s1375_s1 = inlined_call_operand.hbm [shape: f32[48,32], index: 1, kind: input, shape index: {}]   ;;  %s1376_s2 = inlined_call_operand.hbm [shape: f32[3,32,16], index: 2, kind: input, shape index: {}]   ;;  %s1377_s3 = inlined_call_operand.hbm [shape: f32[3,16,8], index: 3, kind: input, shape index: {}]   ;;  %s1378_s4 = inlined_call_operand.hbm [shape: f32[16,8], index: 4, kind: output, shape index: {}]  }
   0x1   :  { %10 = vsyncpa [#allocation8], 0 }
   0x2   :  { %11 = vsyncpa [#allocation11], 0 }
   0x3   :  { %12 = vsyncpa [#allocation6], 0  ;;  %s1217_s15 = smov [#allocation7]   ;;  %s1218_s17 = smov [#allocation4]  }
   0x4   :  { %s30_s16 = sshll.u32 %s1217_s15, 4  ;;  %s18_s18 = sshll.u32 %s1218_s17, 4  ;;  %s31_s16 = int_to_ptr.vmem [resolvable:$true] %s30_s16  ;;  %s1249_s18 = int_to_ptr.vmem [resolvable:$true] %s18_s18 }
   0x5   :  { %s1099_s21 = scalar_lea.hbm %s1375_s1, 768 }
   0x6   :  { %p1100_p0 = scmp.ne.s32.totalorder %s1375_s1, %s1099_s21  ;;  %p1103_p1 = scmp.lt.u32.totalorder %s1099_s21, %s1375_s1 }
   0x8   :  { %p1105_p2 = pnand %p1103_p1, %p1100_p0 }
   0xa   :  { %1108 = shalt.err (!%p1105_p2)
}
   0xb   :  { %s1109_s26 = scalar_lea.vmem %s31_s16, 768  ;;  %p1114_p4 = scmp.lt.s32.totalorder %s31_s16, %s31_s16 }
   0xc   :  { %p1110_p3 = scmp.ne.s32.totalorder %s31_s16, %s1109_s26  ;;  %p1115_p5 = scmp.lt.s32.totalorder %s1109_s26, %s1109_s26 }
   0xe   :  { %p1116_p6 = por %p1115_p5, %p1114_p4 }
  0x10   :  { %p1117_p7 = pnand %p1116_p6, %p1110_p3 }
  0x12   :  { %1120 = shalt.err (!%p1117_p7)
}
  0x13   :  { %s1219_s27 = smov 128   ;;  %s1220_s28 = smov 8  }
  0x14   :  { %36 = dma.hbm_to_vmem [thread:$0]  %s1375_s1, 768, %s31_s16, [#allocation8], %s1219_s27, %s1219_s27, %s1220_s28  }
  0x15   :  { %s1121_s7 = scalar_lea.hbm %s1374_s0, 256 }
  0x16   :  { %p1122_p8 = scmp.ne.s32.totalorder %s1374_s0, %s1121_s7  ;;  %p1125_p9 = scmp.lt.u32.totalorder %s1121_s7, %s1374_s0 }
  0x18   :  { %p1127_p10 = pnand %p1125_p9, %p1122_p8 }
  0x1a   :  { %1130 = shalt.err (!%p1127_p10)
}
  0x1b   :  { %s1131_s12 = scalar_lea.vmem %s1249_s18, 256  ;;  %p1136_p12 = scmp.lt.s32.totalorder %s1249_s18, %s1249_s18 }
  0x1c   :  { %p1132_p11 = scmp.ne.s32.totalorder %s1249_s18, %s1131_s12  ;;  %p1137_p13 = scmp.lt.s32.totalorder %s1131_s12, %s1131_s12 }
  0x1e   :  { %p1138_p0 = por %p1137_p13, %p1136_p12 }
  0x20   :  { %p1139_p1 = pnand %p1138_p0, %p1132_p11 }
  0x22   :  { %1142 = shalt.err (!%p1139_p1)
}
  0x23   :  { %24 = dma.hbm_to_vmem [thread:$0]  %s1374_s0, 256, %s1249_s18, [#allocation5], %s1219_s27, %s1219_s27, %s1220_s28  }
  0x24   :  { %s1221_s14 = smov [#allocation9]   ;;  %s1222_s16 = smov [#allocation10]  }
  0x25   :  { %s42_s15 = sshll.u32 %s1221_s14, 4  ;;  %s54_s17 = sshll.u32 %s1222_s16, 4  ;;  %s43_s15 = int_to_ptr.vmem [resolvable:$true] %s42_s15  ;;  %s1286_s17 = int_to_ptr.vmem [resolvable:$true] %s54_s17 }
  0x26   :  { %s1143_s21 = scalar_lea.hbm %s1376_s2, 1536 }
  0x27   :  { %p1144_p2 = scmp.ne.s32.totalorder %s1376_s2, %s1143_s21  ;;  %p1147_p3 = scmp.lt.u32.totalorder %s1143_s21, %s1376_s2 }
  0x29   :  { %p1149_p4 = pnand %p1147_p3, %p1144_p2 }
  0x2b   :  { %1152 = shalt.err (!%p1149_p4)
}
  0x2c   :  { %s1153_s0 = scalar_lea.vmem %s43_s15, 1536  ;;  %p1158_p6 = scmp.lt.s32.totalorder %s43_s15, %s43_s15 }
  0x2d   :  { %p1154_p5 = scmp.ne.s32.totalorder %s43_s15, %s1153_s0  ;;  %p1159_p7 = scmp.lt.s32.totalorder %s1153_s0, %s1153_s0 }
  0x2f   :  { %p1160_p8 = por %p1159_p7, %p1158_p6 }
  0x31   :  { %p1161_p9 = pnand %p1160_p8, %p1154_p5 }
  0x33   :  { %1164 = shalt.err (!%p1161_p9)
}
  0x34   :  { %48 = dma.hbm_to_vmem [thread:$0]  %s1376_s2, 1536, %s43_s15, [#allocation8], %s1219_s27, %s1219_s27, %s1220_s28  }
  0x35   :  { %s1165_s5 = scalar_lea.hbm %s1377_s3, 768 }
  0x36   :  { %p1166_p10 = scmp.ne.s32.totalorder %s1377_s3, %s1165_s5  ;;  %p1169_p11 = scmp.lt.u32.totalorder %s1165_s5, %s1377_s3 }
  0x38   :  { %p1171_p12 = pnand %p1169_p11, %p1166_p10 }
  0x3a   :  { %1174 = shalt.err (!%p1171_p12)
}
  0x3b   :  { %s1175_s10 = scalar_lea.vmem %s1286_s17, 768  ;;  %p1180_p0 = scmp.lt.s32.totalorder %s1286_s17, %s1286_s17 }
  0x3c   :  { %p1176_p13 = scmp.ne.s32.totalorder %s1286_s17, %s1175_s10  ;;  %p1181_p1 = scmp.lt.s32.totalorder %s1175_s10, %s1175_s10 }
  0x3e   :  { %p1182_p2 = por %p1181_p1, %p1180_p0 }
  0x40   :  { %p1183_p3 = pnand %p1182_p2, %p1176_p13 }
  0x42   :  { %1186 = shalt.err (!%p1183_p3)
}
  0x43   :  { %60 = dma.hbm_to_vmem [thread:$0]  %s1377_s3, 768, %s1286_s17, [#allocation11], %s1219_s27, %s1219_s27, %s1220_s28  }
  0x44   :  { %1209 = dma.done.wait [#allocation5], 256  }
  0x45   :  { %1210 = vsyncadd [#allocation5], 4294967040 }
  0x46   :  { %1211 = dma.done.wait [#allocation8], 2304  }
  0x47   :  { %1212 = vsyncadd [#allocation8], 4294964992 }
  0x48   :  { %1213 = dma.done.wait [#allocation11], 768  }
  0x49   :  { %1214 = vsyncadd [#allocation11], 4294966528  ;;  %v75_v0 = vld [vmem:[#allocation7] sm:$0xff]  ;;  %v76_v1 = vld [vmem:[#allocation7 + $0x8] sm:$0xff]  ;;  %vm81_vm0 = vcmask 392192   ;;  %vm169_vm1 = vcmask 261120  }
  0x4a   :  { %v77_v2 = vld [vmem:[#allocation7 + $0x10] sm:$0xff]  ;;  %v1020_v3 = vpack.c.bf16 %v76_v1, %v75_v0  ;;  %v78_v4 = vld [vmem:[#allocation7 + $0x18] sm:$0xff]  ;;  %v79_v5 = vld [vmem:[#allocation7 + $0x20] sm:$0xff]  ;;  %vm251_vm2 = vcmask 130048   ;;  %vm584_vm3 = vcmask 64512   ;;  %s1223_s3 = smov [#allocation12]  }
  0x4b   :  { %v1024_v6 = vpack.c.bf16 %v78_v4, %v77_v2  ;;  %v80_v7 = vld [vmem:[#allocation7 + $0x28] sm:$0xff]  ;;  %v1323_v8 = vld [vmem:[#allocation4] sm:$0xff]  ;;  %v166_v10 = vld [vmem:[#allocation9 + $0x8] sm:$0xff]  ;;  %s835_s12 = sshll.u32 %s1223_s3, 4  ;;  %s836_s12 = int_to_ptr.vmem [resolvable:$true] %s835_s12 }
  0x4c   :  { %v165_v9 = vld [vmem:[#allocation9] sm:$0xff]  ;;  %1021 = vmatprep.subr.bf16.mxu0 %v1020_v3  ;;  %933 = vmatprep.mubr.msk.f32.mxu0 %vm81_vm0, %v1323_v8  ;;  %v1028_v12 = vpack.c.bf16 %v80_v7, %v79_v5  ;;  %v338_v14 = vld [vmem:[#allocation9 + $0x48] sm:$0xff]  ;;  %v167_v17 = vld [vmem:[#allocation9 + $0x10] sm:$0xff]  ;;  %s1187_s1 = scalar_lea.vmem %s836_s12, 256  ;;  %p1192_p5 = scmp.lt.s32.totalorder %s836_s12, %s836_s12 }
  0x4d   :  { %1023 = vmatpush3.bf16.msra.mxu0 %v1020_v3  ;;  %v1032_v11 = vpack.c.bf16 %v166_v10, %v165_v9  ;;  %v337_v13 = vld [vmem:[#allocation9 + $0x40] sm:$0xff]  ;;  %v1327_v16 = vld [vmem:[#allocation4 + $0x8] sm:$0xff]  ;;  %v168_v18 = vld [vmem:[#allocation9 + $0x18] sm:$0xff]  ;;  %p1188_p4 = scmp.ne.s32.totalorder %s836_s12, %s1187_s1  ;;  %p1193_p6 = scmp.lt.s32.totalorder %s1187_s1, %s1187_s1 }
  0x4e   :  { %1025 = vmatprep.subr.bf16.mxu0 %v1024_v6  ;;  %v1048_v15 = vpack.c.bf16 %v338_v14, %v337_v13  ;;  %v1036_v19 = vpack.c.bf16 %v168_v18, %v167_v17  ;;  %v339_v20 = vld [vmem:[#allocation9 + $0x50] sm:$0xff]  ;;  %v340_v21 = vld [vmem:[#allocation9 + $0x58] sm:$0xff]  ;;  %v255_v23 = vld [vmem:[#allocation9 + $0x20] sm:$0xff] }
  0x4f   :  { %1033 = vmatprep.subr.bf16.mxu1 %v1032_v11  ;;  %v1052_v22 = vpack.c.bf16 %v340_v21, %v339_v20  ;;  %v256_v24 = vld [vmem:[#allocation9 + $0x28] sm:$0xff]  ;;  %v257_v27 = vld [vmem:[#allocation9 + $0x30] sm:$0xff]  ;;  %v258_v28 = vld [vmem:[#allocation9 + $0x38] sm:$0xff]  ;;  %p1194_p7 = por %p1193_p6, %p1192_p5 }
  0x50   :  { %1035 = vmatpush3.bf16.msra.mxu1 %v1032_v11  ;;  %v1040_v25 = vpack.c.bf16 %v256_v24, %v255_v23  ;;  %v1044_v32 = vpack.c.bf16 %v258_v28, %v257_v27  ;;  %v501_v48 = vld [vmem:[#allocation10] sm:$0xff]  ;;  %v502_v49 = vld [vmem:[#allocation10 + $0x8] sm:$0xff]  ;;  %v588_v51 = vld [vmem:[#allocation10 + $0x10] sm:$0xff] }
  0x51   :  { %1027 = vmatpush3.bf16.msra.mxu0 %v1024_v6  ;;  %1037 = vmatprep.subr.bf16.mxu1 %v1036_v19  ;;  %v1068_v50 = vpack.c.bf16 %v502_v49, %v501_v48  ;;  %v589_v52 = vld [vmem:[#allocation10 + $0x18] sm:$0xff]  ;;  %v668_v55 = vld [vmem:[#allocation10 + $0x20] sm:$0xff]  ;;  %v669_v56 = vld [vmem:[#allocation10 + $0x28] sm:$0xff]  ;;  %p1195_p8 = pnand %p1194_p7, %p1188_p4 }
  0x52   :  { %1029 = vmatprep.subr.bf16.mxu0 %v1028_v12  ;;  %v1072_v53 = vpack.c.bf16 %v589_v52, %v588_v51  ;;  %v1076_v60 = vpack.c.bf16 %v669_v56, %v668_v55 }
  0x54   :  { %1039 = vmatpush3.bf16.msra.mxu1 %v1036_v19 }
  0x55   :  { %1031 = vmatpush3.bf16.msra.mxu0 %v1028_v12  ;;  %1041 = vmatprep.subr.bf16.mxu1 %v1040_v25 }
  0x56   :  { %1049 = vmatprep.subr.bf16.mxu0 %v1048_v15 }
  0x58   :  { %934 = vmatmul.mubr.msk.f32.vlgmr.msra.gmra.mrb[0].mxu0 %vm81_vm0, %v1327_v16 }
  0x59   :  { %1051 = vmatpush3.bf16.msra.mxu0 %v1048_v15 }
  0x5a   :  { %1053 = vmatprep.subr.bf16.mxu0 %v1052_v22 }
  0x5d   :  { %1055 = vmatpush3.bf16.msra.mxu0 %v1052_v22 }
  0x5e   :  { %1069 = vmatprep.subr.bf16.mxu0 %v1068_v50 }
 0x12b   :  { %v935_v26 = vpop.f32.mrb[0].mxu0 }
 0x12c   :  { %v154_v29 = vpop.f32.mrb[1].mxu0  ;;  %v164_v31 = vmax.f32 %v935_v26, 0.0 }
 0x12d   :  { %v163_v30 = vmax.f32 %v154_v29, 0.0 }
 0x12f   :  { %944 = vmatprep.mubr.msk.f32.mxu1 %vm169_vm1, %v163_v30  ;;  %966 = vmatprep.mubr.msk.f32.mxu0 %vm169_vm1, %v163_v30 }
 0x130   :  { %945 = vmatmul.mubr.msk.f32.vlgmr.msra.gmra.mrb[0].mxu1 %vm169_vm1, %v164_v31  ;;  %967 = vmatmul.mubr.msk.f32.vlgmr.msra.gmra.mrb[2].mxu0 %vm169_vm1, %v164_v31 }
 0x131   :  { %1043 = vmatpush3.bf16.msra.mxu1 %v1040_v25  ;;  %955 = vmatprep.mubr.msk.f32.mxu1 %vm169_vm1, %v163_v30 }
 0x132   :  { %1045 = vmatprep.subr.bf16.mxu1 %v1044_v32  ;;  %1071 = vmatpush3.bf16.msra.mxu0 %v1068_v50 }
 0x133   :  { %1073 = vmatprep.subr.bf16.mxu0 %v1072_v53 }
 0x135   :  { %1047 = vmatpush3.bf16.msra.mxu1 %v1044_v32 }
 0x138   :  { %956 = vmatmul.mubr.msk.f32.vlgmr.msra.gmra.mrb[2].mxu1 %vm169_vm1, %v164_v31 }
 0x139   :  { %981 = vmatprep.mubr.msk.f32.mxu1 %vm81_vm0, %v1323_v8 }
 0x203   :  { %v946_v33 = vpop.f32.mrb[0].mxu1  ;;  %v968_v34 = vpop.f32.mrb[2].mxu0 }
 0x204   :  { %253 = vst.msk [vmem:[#allocation2 + $0x8] sm:$0xff] %vm251_vm2, %v946_v33  ;;  %417 = vst.msk [vmem:[#allocation2 + $0x28] sm:$0xff] %vm251_vm2, %v968_v34  ;;  %v242_v35 = vpop.f32.mrb[1].mxu1  ;;  %v407_v36 = vpop.f32.mrb[3].mxu0 }
 0x205   :  { %252 = vst.msk [vmem:[#allocation2] sm:$0xff] %vm251_vm2, %v242_v35  ;;  %416 = vst.msk [vmem:[#allocation2 + $0x20] sm:$0xff] %vm251_vm2, %v407_v36 }
 0x20b   :  { %v957_v37 = vpop.f32.mrb[2].mxu1  ;;  %v419_v38 = vld [vmem:[#allocation2 + $0x8] sm:$0xff] }
 0x20c   :  { %335 = vst.msk [vmem:[#allocation2 + $0x18] sm:$0xff] %vm251_vm2, %v957_v37  ;;  %v325_v39 = vpop.f32.mrb[3].mxu1  ;;  %v418_v40 = vld [vmem:[#allocation2] sm:$0xff]  ;;  %v423_v45 = vld [vmem:[#allocation2 + $0x28] sm:$0xff] }
 0x20d   :  { %334 = vst.msk [vmem:[#allocation2 + $0x10] sm:$0xff] %vm251_vm2, %v325_v39  ;;  %v1056_v41 = vpack.c.bf16 %v419_v38, %v418_v40  ;;  %v422_v44 = vld [vmem:[#allocation2 + $0x20] sm:$0xff] }
 0x20e   :  { %v1064_v47 = vpack.c.bf16 %v423_v45, %v422_v44 }
 0x20f   :  { %1057 = vmatprep.subr.bf16.mxu1 %v1056_v41 }
 0x210   :  { %1059 = vmatpush3.bf16.msra.mxu1 %v1056_v41 }
 0x213   :  { %v421_v42 = vld [vmem:[#allocation2 + $0x18] sm:$0xff] }
 0x214   :  { %v420_v43 = vld [vmem:[#allocation2 + $0x10] sm:$0xff] }
 0x215   :  { %v1060_v46 = vpack.c.bf16 %v421_v42, %v420_v43 }
 0x217   :  { %1061 = vmatprep.subr.bf16.mxu1 %v1060_v46 }
 0x218   :  { %1063 = vmatpush3.bf16.msra.mxu1 %v1060_v46 }
 0x219   :  { %1065 = vmatprep.subr.bf16.mxu1 %v1064_v47 }
 0x21c   :  { %1067 = vmatpush3.bf16.msra.mxu1 %v1064_v47 }
 0x21f   :  { %982 = vmatmul.mubr.msk.f32.vlgmr.msra.gmra.mrb[4].mxu1 %vm81_vm0, %v1327_v16 }
 0x220   :  { %1017 = vmatprep.mubr.msk.f32.mxu1 %vm81_vm0, %v1323_v8 }
 0x2f2   :  { %v983_v54 = vpop.f32.mrb[4].mxu1 }
 0x2f3   :  { %v490_v57 = vpop.f32.mrb[5].mxu1  ;;  %v500_v59 = vmax.f32 %v983_v54, 0.0 }
 0x2f4   :  { %v499_v58 = vmax.f32 %v490_v57, 0.0 }
 0x2f6   :  { %988 = vmatprep.mubr.msk.f32.mxu0 %vm251_vm2, %v499_v58 }
 0x2f7   :  { %989 = vmatmul.mubr.msk.f32.vlgmr.msra.gmra.mrb[4].mxu0 %vm251_vm2, %v500_v59 }
 0x2f8   :  { %1075 = vmatpush3.bf16.msra.mxu0 %v1072_v53  ;;  %995 = vmatprep.mubr.msk.f32.mxu0 %vm251_vm2, %v499_v58 }
 0x2f9   :  { %1077 = vmatprep.subr.bf16.mxu0 %v1076_v60 }
 0x2fb   :  { %996 = vmatmul.mubr.msk.f32.vlgmr.msra.gmra.mrb[6].mxu0 %vm251_vm2, %v500_v59 }
 0x2fc   :  { %1079 = vmatpush3.bf16.msra.mxu0 %v1076_v60  ;;  %1002 = vmatprep.mubr.msk.f32.mxu0 %vm251_vm2, %v499_v58 }
 0x2ff   :  { %1003 = vmatmul.mubr.msk.f32.vlgmr.msra.gmra.mrb[8].mxu0 %vm251_vm2, %v500_v59 }
 0x3ca   :  { %v990_v61 = vpop.f32.mrb[4].mxu0 }
 0x3cb   :  { %586 = vst.msk [vmem:[#allocation3 + $0x8] sm:$0xff] %vm584_vm3, %v990_v61  ;;  %v575_v62 = vpop.f32.mrb[5].mxu0 }
 0x3cc   :  { %585 = vst.msk [vmem:[#allocation3] sm:$0xff] %vm584_vm3, %v575_v62 }
 0x3ce   :  { %v997_v63 = vpop.f32.mrb[6].mxu0 }
 0x3cf   :  { %666 = vst.msk [vmem:[#allocation3 + $0x18] sm:$0xff] %vm584_vm3, %v997_v63  ;;  %v656_v0 = vpop.f32.mrb[7].mxu0 }
 0x3d0   :  { %665 = vst.msk [vmem:[#allocation3 + $0x10] sm:$0xff] %vm584_vm3, %v656_v0 }
 0x3d2   :  { %v1004_v1 = vpop.f32.mrb[8].mxu0  ;;  %v748_v2 = vld [vmem:[#allocation3 + $0x8] sm:$0xff] }
 0x3d3   :  { %746 = vst.msk [vmem:[#allocation3 + $0x28] sm:$0xff] %vm584_vm3, %v1004_v1  ;;  %v736_v3 = vpop.f32.mrb[9].mxu0  ;;  %v747_v4 = vld [vmem:[#allocation3] sm:$0xff] }
 0x3d4   :  { %745 = vst.msk [vmem:[#allocation3 + $0x20] sm:$0xff] %vm584_vm3, %v736_v3  ;;  %v1080_v5 = vpack.c.bf16 %v748_v2, %v747_v4 }
 0x3d6   :  { %1081 = vmatprep.subr.bf16.mxu1 %v1080_v5  ;;  %v750_v6 = vld [vmem:[#allocation3 + $0x18] sm:$0xff] }
 0x3d7   :  { %1083 = vmatpush3.bf16.msra.mxu1 %v1080_v5  ;;  %v749_v7 = vld [vmem:[#allocation3 + $0x10] sm:$0xff] }
 0x3d8   :  { %v1084_v8 = vpack.c.bf16 %v750_v6, %v749_v7 }
 0x3da   :  { %1085 = vmatprep.subr.bf16.mxu1 %v1084_v8  ;;  %v752_v9 = vld [vmem:[#allocation3 + $0x28] sm:$0xff] }
 0x3db   :  { %1087 = vmatpush3.bf16.msra.mxu1 %v1084_v8  ;;  %v751_v10 = vld [vmem:[#allocation3 + $0x20] sm:$0xff] }
 0x3dc   :  { %v1088_v11 = vpack.c.bf16 %v752_v9, %v751_v10 }
 0x3de   :  { %1089 = vmatprep.subr.bf16.mxu1 %v1088_v11 }
 0x3df   :  { %1091 = vmatpush3.bf16.msra.mxu1 %v1088_v11 }
 0x3e2   :  { %1018 = vmatmul.mubr.msk.f32.vlgmr.msra.gmra.mrb[6].mxu1 %vm81_vm0, %v1327_v16 }
 0x4b5   :  { %v1019_v12 = vpop.f32.mrb[6].mxu1 }
 0x4b6   :  { %829 = vst.msk [vmem:[#allocation12 + $0x8] sm:$0xff] %vm584_vm3, %v1019_v12  ;;  %v819_v13 = vpop.f32.mrb[7].mxu1 }
 0x4b7   :  { %828 = vst.msk [vmem:[#allocation12] sm:$0xff] %vm584_vm3, %v819_v13 }
 0x4b8   :  { %1198 = shalt.err (!%p1195_p8)
}
 0x4b9   :  { %s1199_s15 = scalar_lea.hbm %s1378_s4, 256 }
 0x4ba   :  { %p1200_p9 = scmp.ne.s32.totalorder %s1378_s4, %s1199_s15  ;;  %p1203_p10 = scmp.lt.u32.totalorder %s1199_s15, %s1378_s4 }
 0x4bc   :  { %p1205_p11 = pnand %p1203_p10, %p1200_p9 }
 0x4be   :  { %1208 = shalt.err (!%p1205_p11)
}
 0x4bf   :  { %841 = dma.vmem_to_hbm [thread:$0]  %s836_s12, 256, %s1378_s4, [#allocation6], %s1219_s27, %s1219_s27, %s1220_s28  }
 0x4c0   :  { %1215 = dma.done.wait [#allocation6], 256  }
 0x4c1   :  { %1216 = vsyncadd [#allocation6], 4294967040 }
 0x4c2   :  { %845 = vsyncpa [#allocation5], 1 }
 0x4c3   :  { %846 = vsyncpa [#allocation8], 1 }
 0x4c4   :  { %847 = vsyncpa [#allocation11], 1 }
 0x4c5   :  { %848 = vsyncpa [#allocation6], 1 }

</bundles_post_ra>
